<compile_context>
chip_gen: v7x
topology: tpu7x:2x2x1
jax: 0.10.0
libtpu: 0.0.40
codegen_flags: <defaults>
</compile_context>

<pallas_src>
import functools

import jax
import jax.numpy as jnp
from jax import lax
from jax.experimental import pallas as pl
from jax.experimental.pallas import tpu as pltpu

LANE = 128
VMEM_LIMIT = 32 * 1024 * 1024  # conservative: fits v5e/v6e/v7x scoped VMEM


def _round_up(x, m):
    return ((x + m - 1) // m) * m


def _full_spec(shape):
    nd = len(shape)
    return pl.BlockSpec(shape, lambda i: (0,) * nd)


# --------------------- kernel 1: one propagation layer ----------------------
# For each view v:  mm = G_v @ feats_v   (tiled over rows i and contraction k)
# finalize:         feats_out = mm / (layer+2)            (carried features)
#                   acc_out   = acc_in + mm * rsqrt(|mm|^2)   (L2-normalized)

def prop_layer_kernel(g_ref, f_ref, acc_in_ref, f_out_ref, acc_out_ref,
                      mm_ref, *, inv_scale):
    k = pl.program_id(2)

    @pl.when(k == 0)
    def _init():
        mm_ref[...] = jnp.zeros_like(mm_ref)

    # bf16 x bf16 MXU matmul with f32 accumulation.
    mm_ref[...] += jnp.dot(g_ref[...], f_ref[...].astype(jnp.bfloat16),
                           preferred_element_type=jnp.float32)

    @pl.when(k == pl.num_programs(2) - 1)
    def _finalize():
        mm = mm_ref[...]
        # F.normalize(mm * inv_scale) == mm * rsqrt(sum(mm^2)) (scale cancels);
        # the clamp mirrors F.normalize's eps=1e-12 on the norm.
        ssq = jnp.sum(mm * mm, axis=1, keepdims=True)
        inv_norm = lax.rsqrt(jnp.maximum(ssq, 1e-24))
        f_out_ref[...] = mm * inv_scale
        acc_out_ref[...] = acc_in_ref[...] + mm * inv_norm


def pallas_propagate_layer(g, feats, acc, *, inv_scale, tile):
    v, n_pad, _ = g.shape
    d_pad = feats.shape[-1]
    grid = (v, n_pad // tile, n_pad // tile)
    out_shape = (jax.ShapeDtypeStruct((v, n_pad, d_pad), jnp.float32),
                 jax.ShapeDtypeStruct((v, n_pad, d_pad), jnp.float32))
    return pl.pallas_call(
        functools.partial(prop_layer_kernel, inv_scale=inv_scale),
        grid_spec=pltpu.PrefetchScalarGridSpec(
            num_scalar_prefetch=0,
            grid=grid,
            in_specs=[
                pl.BlockSpec((None, tile, tile), lambda v_, i, k: (v_, i, k)),
                pl.BlockSpec((None, tile, d_pad), lambda v_, i, k: (v_, k, 0)),
                pl.BlockSpec((None, tile, d_pad), lambda v_, i, k: (v_, i, 0)),
            ],
            out_specs=[
                pl.BlockSpec((None, tile, d_pad), lambda v_, i, k: (v_, i, 0)),
                pl.BlockSpec((None, tile, d_pad), lambda v_, i, k: (v_, i, 0)),
            ],
            scratch_shapes=[pltpu.VMEM((tile, d_pad), jnp.float32)],
        ),
        out_shape=out_shape,
        compiler_params=pltpu.CompilerParams(
            dimension_semantics=("parallel", "parallel", "arbitrary"),
            vmem_limit_bytes=VMEM_LIMIT),
    )(g, feats, acc)


# ----------------- kernel 2: tiled bundle-aggregation matmul ----------------

def agg_matmul_kernel(a_ref, b_ref, o_ref, acc_ref):
    k = pl.program_id(1)

    @pl.when(k == 0)
    def _init():
        acc_ref[...] = jnp.zeros_like(acc_ref)

    acc_ref[...] += jnp.dot(a_ref[...], b_ref[...].astype(jnp.bfloat16),
                            preferred_element_type=jnp.float32)

    @pl.when(k == pl.num_programs(1) - 1)
    def _finalize():
        o_ref[...] = acc_ref[...]


def pallas_agg_matmul(agg, feats):
    m, kdim = agg.shape
    d_pad = feats.shape[-1]
    tm = min(256, _round_up(m, 8))
    m_pad = _round_up(m, tm)
    tk = min(256, _round_up(kdim, LANE))
    k_pad = _round_up(kdim, tk)
    a = jnp.zeros((m_pad, k_pad), jnp.bfloat16).at[:m, :kdim].set(
        agg.astype(jnp.bfloat16))
    b = jnp.zeros((k_pad, d_pad), jnp.float32).at[:kdim, :].set(feats)
    out = pl.pallas_call(
        agg_matmul_kernel,
        grid_spec=pltpu.PrefetchScalarGridSpec(
            num_scalar_prefetch=0,
            grid=(m_pad // tm, k_pad // tk),
            in_specs=[
                pl.BlockSpec((tm, tk), lambda i, k: (i, k)),
                pl.BlockSpec((tk, d_pad), lambda i, k: (k, 0)),
            ],
            out_specs=pl.BlockSpec((tm, d_pad), lambda i, k: (i, 0)),
            scratch_shapes=[pltpu.VMEM((tm, d_pad), jnp.float32)],
        ),
        out_shape=jax.ShapeDtypeStruct((m_pad, d_pad), jnp.float32),
        compiler_params=pltpu.CompilerParams(
            dimension_semantics=("parallel", "arbitrary"),
            vmem_limit_bytes=VMEM_LIMIT),
    )(a, b)
    return out[:m]


# ------------- kernel 3: fused BPR + cross-view contrastive loss ------------
# Inputs are 2-D, lane-dense (D padded to 128). Per-row loss terms come out;
# the tiny scalar means stay in XLA.

def loss_kernel(ilu_ref, blu_ref, ilb0_ref, blb0_ref,
                ilur_ref, blur_ref, dil_ref, dbl_ref,
                bpr_ref, ucl_ref, bcl_ref, *, c_temp):
    # BPR: diff[row] = pred_pos - pred_neg (dil/dbl hold pos-minus-neg deltas)
    diff = (jnp.sum(ilur_ref[...] * dil_ref[...], axis=-1, keepdims=True)
            + jnp.sum(blur_ref[...] * dbl_ref[...], axis=-1, keepdims=True))
    # -log(sigmoid(x)) = softplus(-x), computed stably.
    bpr_ref[...] = jnp.maximum(-diff, 0.0) + jnp.log(
        1.0 + jnp.exp(-jnp.abs(diff)))

    inv_temp = 1.0 / c_temp

    def info_nce(pos, aug):
        pos_n = pos * lax.rsqrt(
            jnp.maximum(jnp.sum(pos * pos, axis=-1, keepdims=True), 1e-24))
        aug_n = aug * lax.rsqrt(
            jnp.maximum(jnp.sum(aug * aug, axis=-1, keepdims=True), 1e-24))
        pos_score = jnp.exp(
            jnp.sum(pos_n * aug_n, axis=-1, keepdims=True) * inv_temp)
        # contract last dims directly (no transpose / XLU pass)
        ttl = lax.dot_general(pos_n, aug_n, (((1,), (1,)), ((), ())),
                              preferred_element_type=jnp.float32)
        ttl_score = jnp.sum(jnp.exp(ttl * inv_temp), axis=-1, keepdims=True)
        return -jnp.log(pos_score / ttl_score)          # (bs, 1)

    ucl_ref[...] = info_nce(ilu_ref[...], blu_ref[...])
    bcl_ref[...] = info_nce(ilb0_ref[...], blb0_ref[...])


def pallas_loss_terms(ilu, blu, ilb0, blb0, ilu_rep, blu_rep, d_il, d_bl, *,
                      c_temp):
    bs = ilu.shape[0]
    rn = ilu_rep.shape[0]
    ins = (ilu, blu, ilb0, blb0, ilu_rep, blu_rep, d_il, d_bl)
    return pl.pallas_call(
        functools.partial(loss_kernel, c_temp=c_temp),
        grid=(1,),
        in_specs=[_full_spec(x.shape) for x in ins],
        out_specs=[_full_spec((rn, 1)), _full_spec((bs, 1)),
                   _full_spec((bs, 1))],
        out_shape=(jax.ShapeDtypeStruct((rn, 1), jnp.float32),
                   jax.ShapeDtypeStruct((bs, 1), jnp.float32),
                   jax.ShapeDtypeStruct((bs, 1), jnp.float32)),
    )(*ins)


# ------------------------------- model glue ---------------------------------

def xavier_normal(key, shape):
    fan_out, fan_in = shape  # torch: fan_in = size(1), fan_out = size(0)
    std = (2.0 / (fan_in + fan_out)) ** 0.5
    return std * jax.random.normal(key, shape, dtype=jnp.float32)


def bipartite_block(x):
    m, n = x.shape
    top = jnp.concatenate([jnp.zeros((m, m), jnp.float32), x], axis=1)
    bot = jnp.concatenate([x.T, jnp.zeros((n, n), jnp.float32)], axis=1)
    return jnp.concatenate([top, bot], axis=0)


def laplace_transform(a):
    rs = jnp.sum(a, axis=1)
    cs = jnp.sum(a, axis=0)
    d_r = 1.0 / (jnp.sqrt(rs) + 1e-8)
    d_c = 1.0 / (jnp.sqrt(cs) + 1e-8)
    return d_r[:, None] * a * d_c[None, :]


def dsrccl_forward(params, graphs, users_idx, bundles_idx, *, num_layers,
                   c_temp):
    uf, bf, sf = params["users"], params["bundles"], params["services"]
    svc_graph, bdl_graph, agg_graph = graphs
    nu, d = uf.shape
    nb_tot = bf.shape[0]
    ns = sf.shape[0]
    d_pad = _round_up(d, LANE)

    # ---- batched, padded setup for the two propagation views ----
    n1, n2 = nu + ns, nu + nb_tot
    n_max = max(n1, n2)
    tile = min(256, _round_up(n_max, LANE))
    n_pad = _round_up(n_max, tile)

    g = jnp.zeros((2, n_pad, n_pad), jnp.bfloat16)
    g = g.at[0, :n1, :n1].set(svc_graph.astype(jnp.bfloat16))
    g = g.at[1, :n2, :n2].set(bdl_graph.astype(jnp.bfloat16))

    f0 = jnp.zeros((2, n_pad, d_pad), jnp.float32)
    f0 = f0.at[0, :nu, :d].set(uf)
    f0 = f0.at[0, nu:n1, :d].set(sf)
    f0 = f0.at[1, :nu, :d].set(uf)
    f0 = f0.at[1, nu:n2, :d].set(bf)

    feats, acc = f0, f0  # all_features[0] = features
    for layer in range(num_layers):
        feats, acc = pallas_propagate_layer(
            g, feats, acc, inv_scale=1.0 / (layer + 2.0), tile=tile)

    il_users = acc[0, :nu]
    il_services = acc[0, nu:n1]
    bl_users = acc[1, :nu]
    bl_bundles = acc[1, nu:n2]

    # ---- bundle aggregation: agg_graph @ IL_services ----
    il_bundles = pallas_agg_matmul(agg_graph, il_services)      # (nb, d_pad)

    # ---- tiny gathers / batch assembly (plain XLA) ----
    users = users_idx[:, 0]
    ilu = il_users[users]                  # (bs, d_pad)
    blu = bl_users[users]
    ilb = il_bundles[bundles_idx]          # (bs, nbr, d_pad)
    blb = bl_bundles[bundles_idx]
    bs, nbr = bundles_idx.shape
    nneg = nbr - 1
    d_il = (ilb[:, :1, :] - ilb[:, 1:, :]).reshape(bs * nneg, d_pad)
    d_bl = (blb[:, :1, :] - blb[:, 1:, :]).reshape(bs * nneg, d_pad)
    ilu_rep = jnp.repeat(ilu, nneg, axis=0)
    blu_rep = jnp.repeat(blu, nneg, axis=0)
    ilb0 = ilb[:, 0, :]
    blb0 = blb[:, 0, :]

    bpr_t, ucl_t, bcl_t = pallas_loss_terms(
        ilu, blu, ilb0, blb0, ilu_rep, blu_rep, d_il, d_bl, c_temp=c_temp)
    b_loss = jnp.mean(bpr_t)
    c_loss = 0.5 * (jnp.mean(ucl_t) + jnp.mean(bcl_t))
    return b_loss, c_loss


# ---------------------------------- main -------------------------------------

if __name__ == "__main__":
    key = jax.random.PRNGKey(0)
    D = 32                     # embedding_size
    NU, NB, NS = 16, 12, 24    # num_users, num_bundles, num_services
    NUM_LAYERS = 2
    C_TEMP = 0.25
    BS, NNEG = 4, 2
    NB_PER_ROW = 1 + NNEG      # bundles per batch row (1 pos + negs)

    k = jax.random.split(key, 8)
    params = {
        "users": xavier_normal(k[0], (NU, D)),
        "bundles": xavier_normal(k[1], (NB, D)),
        "services": xavier_normal(k[2], (NS, D)),
    }

    # synthetic interaction graphs (binary, deterministic)
    ui = (jax.random.uniform(k[3], (NU, NS)) < 0.3).astype(jnp.float32)
    ub = (jax.random.uniform(k[4], (NU, NB)) < 0.3).astype(jnp.float32)
    bi = (jax.random.uniform(k[5], (NB, NS)) < 0.3).astype(jnp.float32)

    svc_graph = laplace_transform(bipartite_block(ui))        # (NU+NS, NU+NS)
    bdl_graph = laplace_transform(bipartite_block(ub))        # (NU+NB, NU+NB)
    agg_graph = (1.0 / (jnp.sum(bi, axis=1) + 1e-8))[:, None] * bi  # (NB, NS)
    graphs = (svc_graph, bdl_graph, agg_graph)

    users_idx = jax.random.randint(k[6], (BS, 1), 0, NU)
    bundles_idx = jax.random.randint(k[7], (BS, NB_PER_ROW), 0, NB)

    b_loss, c_loss = dsrccl_forward(
        params, graphs, users_idx, bundles_idx,
        num_layers=NUM_LAYERS, c_temp=C_TEMP)
    jax.block_until_ready((b_loss, c_loss))
    print("KERNEL_OK")
</pallas_src>

<mosaic_0001>
module attributes {stable_mosaic.version = 11 : i64} {
  func.func @prop_layer_kernel(%arg0: i32, %arg1: i32, %arg2: i32, %arg3: memref<1x128x128xbf16, #tpu.memory_space<vmem>>, %arg4: memref<1x128x128xf32, #tpu.memory_space<vmem>>, %arg5: memref<1x128x128xf32, #tpu.memory_space<vmem>>, %arg6: memref<1x128x128xf32, #tpu.memory_space<vmem>>, %arg7: memref<1x128x128xf32, #tpu.memory_space<vmem>>, %arg8: memref<128x128xf32, #tpu.memory_space<vmem>>) attributes {dimension_semantics = [#tpu.dimension_semantics<parallel>, #tpu.dimension_semantics<parallel>, #tpu.dimension_semantics<arbitrary>], iteration_bounds = array<i64: 2, 1, 1>, scalar_prefetch = 0 : i64, scratch_operands = 1 : i64, tpu.core_type = #tpu.core_type<tc>, window_params = [{transform_indices = @transform_0, window_bounds = array<i64: 1, 128, 128>}, {transform_indices = @transform_1, window_bounds = array<i64: 1, 128, 128>}, {transform_indices = @transform_2, window_bounds = array<i64: 1, 128, 128>}, {transform_indices = @transform_3, window_bounds = array<i64: 1, 128, 128>}, {transform_indices = @transform_4, window_bounds = array<i64: 1, 128, 128>}]} {
    %c0_i32 = arith.constant 0 : i32
    %0 = arith.cmpi eq, %arg2, %c0_i32 : i32
    %1 = arith.extui %0 : i1 to i32
    %c0_i32_0 = arith.constant 0 : i32
    %2 = arith.cmpi ne, %1, %c0_i32_0 : i32
    scf.if %2 {
      %cst_12 = arith.constant 0.000000e+00 : f32
      %15 = vector.broadcast %cst_12 : f32 to vector<128x128xf32>
      %c0_13 = arith.constant 0 : index
      %c0_14 = arith.constant 0 : index
      %16 = vector.load %arg8[%c0_13, %c0_14] : memref<128x128xf32, #tpu.memory_space<vmem>>, vector<128x128xf32>
      tpu.vector_store %arg8[%c0_13, %c0_14], %15 {strides = array<i32>} : memref<128x128xf32, #tpu.memory_space<vmem>>, vector<128x128xf32>,
    } else {
    }
    %c0 = arith.constant 0 : index
    %c0_1 = arith.constant 0 : index
    %3 = vector.load %arg8[%c0, %c0_1] : memref<128x128xf32, #tpu.memory_space<vmem>>, vector<128x128xf32>
    %c0_2 = arith.constant 0 : index
    %c0_3 = arith.constant 0 : index
    %c0_4 = arith.constant 0 : index
    %4 = vector.load %arg3[%c0_2, %c0_3, %c0_4] : memref<1x128x128xbf16, #tpu.memory_space<vmem>>, vector<1x128x128xbf16>
    %5 = vector.shape_cast %4 : vector<1x128x128xbf16> to vector<128x128xbf16>
    %c0_5 = arith.constant 0 : index
    %c0_6 = arith.constant 0 : index
    %c0_7 = arith.constant 0 : index
    %6 = vector.load %arg4[%c0_5, %c0_6, %c0_7] : memref<1x128x128xf32, #tpu.memory_space<vmem>>, vector<1x128x128xf32>
    %7 = vector.shape_cast %6 : vector<1x128x128xf32> to vector<128x128xf32>
    %8 = arith.truncf %7 : vector<128x128xf32> to vector<128x128xbf16>
    %cst = arith.constant dense<0.000000e+00> : vector<128x128xf32>
    %9 = tpu.matmul %5, %8, %cst {dimension_numbers = #tpu.dot_dimension_numbers<[1], [0], [0], [1], [0, 0, 1, 1], [], []>} : vector<128x128xbf16>, vector<128x128xbf16>, vector<128x128xf32> -> vector<128x128xf32>
    %10 = arith.addf %3, %9 : vector<128x128xf32>
    %c0_8 = arith.constant 0 : index
    %c0_9 = arith.constant 0 : index
    %11 = vector.load %arg8[%c0_8, %c0_9] : memref<128x128xf32, #tpu.memory_space<vmem>>, vector<128x128xf32>
    tpu.vector_store %arg8[%c0_8, %c0_9], %10 {strides = array<i32>} : memref<128x128xf32, #tpu.memory_space<vmem>>, vector<128x128xf32>,
    %c0_i32_10 = arith.constant 0 : i32
    %12 = arith.cmpi eq, %arg2, %c0_i32_10 : i32
    %13 = arith.extui %12 : i1 to i32
    %c0_i32_11 = arith.constant 0 : i32
    %14 = arith.cmpi ne, %13, %c0_i32_11 : i32
    scf.if %14 {
      %c0_12 = arith.constant 0 : index
      %c0_13 = arith.constant 0 : index
      %15 = vector.load %arg8[%c0_12, %c0_13] : memref<128x128xf32, #tpu.memory_space<vmem>>, vector<128x128xf32>
      %16 = arith.mulf %15, %15 : vector<128x128xf32>
      %cst_14 = arith.constant dense<0.000000e+00> : vector<128xf32>
      %17 = vector.multi_reduction <add>, %16, %cst_14 [1] : vector<128x128xf32> to vector<128xf32>
      %18 = vector.shape_cast %17 : vector<128xf32> to vector<128x1xf32>
      %cst_15 = arith.constant 1.000000e-24 : f32
      %19 = vector.broadcast %cst_15 : f32 to vector<128x1xf32>
      %20 = arith.maximumf %18, %19 : vector<128x1xf32>
      %21 = math.rsqrt %20 : vector<128x1xf32>
      %cst_16 = arith.constant 5.000000e-01 : f32
      %22 = vector.broadcast %cst_16 : f32 to vector<128x128xf32>
      %23 = arith.mulf %15, %22 : vector<128x128xf32>
      %c0_17 = arith.constant 0 : index
      %c0_18 = arith.constant 0 : index
      %c0_19 = arith.constant 0 : index
      %24 = vector.load %arg6[%c0_17, %c0_18, %c0_19] : memref<1x128x128xf32, #tpu.memory_space<vmem>>, vector<1x128x128xf32>
      %25 = vector.shape_cast %24 : vector<1x128x128xf32> to vector<128x128xf32>
      %26 = vector.shape_cast %23 : vector<128x128xf32> to vector<1x128x128xf32>
      tpu.vector_store %arg6[%c0_17, %c0_18, %c0_19], %26 {strides = array<i32>} : memref<1x128x128xf32, #tpu.memory_space<vmem>>, vector<1x128x128xf32>,
      %c0_20 = arith.constant 0 : index
      %c0_21 = arith.constant 0 : index
      %c0_22 = arith.constant 0 : index
      %27 = vector.load %arg5[%c0_20, %c0_21, %c0_22] : memref<1x128x128xf32, #tpu.memory_space<vmem>>, vector<1x128x128xf32>
      %28 = vector.shape_cast %27 : vector<1x128x128xf32> to vector<128x128xf32>
      %29 = vector.broadcast %21 : vector<128x1xf32> to vector<128x128xf32>
      %30 = arith.mulf %15, %29 : vector<128x128xf32>
      %31 = arith.addf %28, %30 : vector<128x128xf32>
      %c0_23 = arith.constant 0 : index
      %c0_24 = arith.constant 0 : index
      %c0_25 = arith.constant 0 : index
      %32 = vector.load %arg7[%c0_23, %c0_24, %c0_25] : memref<1x128x128xf32, #tpu.memory_space<vmem>>, vector<1x128x128xf32>
      %33 = vector.shape_cast %32 : vector<1x128x128xf32> to vector<128x128xf32>
      %34 = vector.shape_cast %31 : vector<128x128xf32> to vector<1x128x128xf32>
      tpu.vector_store %arg7[%c0_23, %c0_24, %c0_25], %34 {strides = array<i32>} : memref<1x128x128xf32, #tpu.memory_space<vmem>>, vector<1x128x128xf32>,
    } else {
    }
    return
  }
  func.func @transform_0(%arg0: i32, %arg1: i32, %arg2: i32) -> (i32, i32, i32) {
    %c0_i32 = arith.constant 0 : i32
    return %arg0, %arg1, %arg2 : i32, i32, i32
  }
  func.func @transform_1(%arg0: i32, %arg1: i32, %arg2: i32) -> (i32, i32, i32) {
    %c0_i32 = arith.constant 0 : i32
    %c0_i32_0 = arith.constant 0 : i32
    return %arg0, %arg2, %c0_i32 : i32, i32, i32
  }
  func.func @transform_2(%arg0: i32, %arg1: i32, %arg2: i32) -> (i32, i32, i32) {
    %c0_i32 = arith.constant 0 : i32
    %c0_i32_0 = arith.constant 0 : i32
    return %arg0, %arg1, %c0_i32 : i32, i32, i32
  }
  func.func @transform_3(%arg0: i32, %arg1: i32, %arg2: i32) -> (i32, i32, i32) {
    %c0_i32 = arith.constant 0 : i32
    %c0_i32_0 = arith.constant 0 : i32
    return %arg0, %arg1, %c0_i32 : i32, i32, i32
  }
  func.func @transform_4(%arg0: i32, %arg1: i32, %arg2: i32) -> (i32, i32, i32) {
    %c0_i32 = arith.constant 0 : i32
    %c0_i32_0 = arith.constant 0 : i32
    return %arg0, %arg1, %c0_i32 : i32, i32, i32
  }
}

</mosaic_0001>

<bundles_post_ra>
// kernel: tpu_custom_call.1
= control target key start
LH: loop header
LB: loop body
LE: loop exit
PB: predicated region body
PF: predicated region fallthrough
CT: control target
= control target key end

     0   :  { %s1981_s0 = inlined_call_operand.hbm [shape: bf16[2,128,128], index: 0, kind: input, shape index: {}]   ;;  %s1982_s1 = inlined_call_operand.hbm [shape: f32[2,128,128], index: 1, kind: input, shape index: {}]   ;;  %s1983_s2 = inlined_call_operand.hbm [shape: f32[2,128,128], index: 2, kind: input, shape index: {}]   ;;  %s1984_s3 = inlined_call_operand.hbm [shape: f32[2,128,128], index: 3, kind: output, shape index: {0}]   ;;  %s1985_s4 = inlined_call_operand.hbm [shape: f32[2,128,128], index: 4, kind: output, shape index: {1}]  }
   0x1   :  { %1993 = sst [smem:[#allocation19_spill]] %s1982_s1 }
   0x2   :  { %10 = vsyncpa [#allocation4], 0 }
   0x3   :  { %12 = vsyncpa [#allocation4 + $0x1], 0 }
   0x4   :  { %13 = vsyncpa [#allocation7], 0 }
   0x5   :  { %15 = vsyncpa [#allocation7 + $0x1], 0 }
   0x6   :  { %16 = vsyncpa [#allocation5], 0 }
   0x7   :  { %18 = vsyncpa [#allocation5 + $0x1], 0 }
   0x8   :  { %19 = vsyncpa [#allocation11], 0 }
   0x9   :  { %21 = vsyncpa [#allocation11 + $0x1], 0  ;;  %s1483_s15 = smov 0   ;;  %s1485_s16 = smov 0  }
   0xa   :  { %s1487_s17 = smov 0   ;;  %s1489_s18 = smov 0  }
   0xb   :  { %s1491_s19 = smov 0   ;;  %s1493_s20 = smov 0  }
   0xc LB: > { %1994 = sst [smem:[#allocation16_spill]] %s1441_s19  ;;  %s1514_s21 = sadd.s32 4294967295, %s1445_s20   ;;  %s1445_s20 = sphi %s1493_s20, %s27_s20   ;;  %s1441_s19 = sphi %s1491_s19, %s2015_s19   ;;  %s1437_s18 = sphi %s1489_s18, %s2014_s18   ;;  %s1433_s17 = sphi %s1487_s17, %s2018_s17   ;;  %s1429_s16 = sphi %s1485_s16, %s2017_s16   ;;  %s1425_s15 = sphi %s1483_s15, %s2016_s15  }
   0xd   : > { %s1011_s22 = sadd.s32 4294967294, %s1445_s20   ;;  %s46_s23 = sadd.s32 1, %s1441_s19 }
   0xe   : > { %s57_s24 = sadd.s32 1, %s1433_s17  ;;  %p48_p0 = scmp.ge.s32.totalorder %s46_s23, 2 }
   0xf   : > { %p64_p1 = scmp.ne.s32.totalorder %s1433_s17, %s1429_s16  ;;  %p65_p2 = scmp.eq.s32.totalorder %s1445_s20, 0 }
  0x10   : > { %p70_p3 = scmp.ne.s32.totalorder %s1429_s16, %s1425_s15  ;;  %s2020_s23 = smov (%p48_p0, %s46_s23), 0 }
  0x11   : > { %1995 = sst [smem:[#allocation17_spill]] %s2020_s23  ;;  %p1526_p4 = por %p65_p2, %p64_p1 }
  0x12   : > { %p71_p5 = scmp.eq.s32.totalorder %s1514_s21, 0  ;;  %s50_s26 = ssub.s32 %s1441_s19, %s2020_s23 }
  0x13   : > { %p152_p6 = scmp.eq.s32.totalorder %s1514_s21, 1  ;;  %p55_p7 = scmp.eq.s32.totalorder %s50_s26, 0 }
  0x14   : > { %p1534_p8 = por %p71_p5, %p70_p3  ;;  %p158_p10 = scmp.eq.s32.totalorder %s1011_s22, 1 }
  0x15   : > { %p1538_p9 = por %p152_p6, %p64_p1  ;;  %p1141_p13 = scmp.lt.s32.totalorder %s1445_s20, 2 }
  0x16   : > { %s1997_s27 = scalar_select %p1534_p8, 1, 0 }
  0x17   : > { %s1998_s28 = scalar_select %p1538_p9, 1, 0 }
  0x18   : > { %s1543_s29 = scalar_select %p55_p7, %s1433_s17, %s57_s24  }
  0x19   : > { %p1545_p11 = por %p158_p10, %p70_p3  ;;  %s1552_s5 = sand.u32 1, %s1433_s17  }
  0x1a   : > { %1999 = sst [smem:[#allocation18_spill]] %s1543_s29  ;;  %s230_s6 = sand.u32 1, %s1445_s20  }
  0x1b   : > { %s2000_s30 = scalar_select %p1545_p11, 1, 0 }
  0x1c   : > { %s1986_s7 = sshll.u32 %s1552_s5, 7  ;;  %p1558_p0 = pnand %p1141_p13, %p1526_p4 }
  0x1d   : > { %s1046_s9 = sshll.u32 %s1441_s19, 11  ;;  %s2002_s1 = sld [smem:[#allocation19_spill]] }
  0x1e   : > { %s234_s13 = scalar_lea.vmem [#allocation6], %s1986_s7  ;;  %s1574_s22 = scalar_lea.sflag [#allocation7], %s230_s6 }
  0x1f   : > { %s243_s14 = sshll.u32 %s234_s13, 4  ;;  %p1580_p2 = pneg %p1558_p0  ;;  %s1572_s14 = int_to_ptr.vmem [resolvable:$true] %s243_s14 }
  0x23   : > { %s1568_s12 = scalar_lea.hbm %s2002_s1, %s1046_s9  ;;  %s1242_s11 = scalar_lea.hbm %s2002_s1, 4096 }
  0x24   : > { %s1237_s24 = scalar_lea.hbm %s1568_s12, 2048  ;;  %p1243_p5 = scmp.lt.u32.totalorder %s1568_s12, %s2002_s1 }
  0x25   : > { %p1238_p1 = scmp.ne.s32.totalorder %s1568_s12, %s1237_s24  ;;  %p1244_p6 = scmp.lt.u32.totalorder %s1242_s11, %s1237_s24 }
  0x26   : > { %p1246_p10 = scmp.lt.u32.totalorder %s1237_s24, %s1568_s12 }
  0x27   : > { %p1240_p3 = pnand %p1580_p2, %p1238_p1  ;;  %p1245_p7 = por %p1244_p6, %p1243_p5 }
  0x29   : > { %p1241_p4 = pneg %p1240_p3  ;;  %p1247_p13 = por %p1246_p10, %p1245_p7 }
  0x2b   : > { %p1248_p12 = pnand %p1247_p13, %p1241_p4 }
  0x2d   : > { %1251 = shalt.err (!%p1248_p12)
}
  0x2e   : > { %s1252_s6 = scalar_lea.vmem %s1572_s14, 2048  ;;  %s1447_s26 = smov [#allocation6]  }
  0x2f   : > { %p1253_p1 = scmp.ne.s32.totalorder %s1572_s14, %s1252_s6  ;;  %s1257_s10 = sshll.u32 %s1447_s26, 4  ;;  %s1258_s10 = int_to_ptr.vmem [resolvable:$false] %s1257_s10 }
  0x30   : > { %s1259_s7 = scalar_lea.vmem %s1258_s10, 4096  ;;  %p1260_p9 = scmp.lt.s32.totalorder %s1572_s14, %s1258_s10 }
  0x31   : > { %p1255_p3 = pnand %p1253_p1, %p1580_p2  ;;  %p1261_p8 = scmp.lt.s32.totalorder %s1259_s7, %s1252_s6 }
  0x33   : > { %p1256_p11 = pneg %p1255_p3  ;;  %p1262_p5 = por %p1261_p8, %p1260_p9 }
  0x35   : > { %p1263_p6 = pnand %p1262_p5, %p1256_p11 }
  0x37   : > { %1266 = shalt.err (!%p1263_p6)
}
  0x38   : > { %s1990_s24 = smov 128   ;;  %s1991_s11 = smov 8  }
  0x39   : > { %1130 = dma.hbm_to_vmem [thread:$0]  (!%p1558_p0), %s1568_s12, 2048, %s1572_s14, %s1574_s22, %s1990_s24, %s1990_s24, %s1991_s11  }
  0x3a   : > { %s1612_s26 = scalar_lea.hbm %s1983_s2, %s1046_s9  ;;  %s2004_s10 = sshll.u32 %s1552_s5, 7 }
  0x3b   : > { %s257_s7 = scalar_lea.vmem [#allocation8], %s2004_s10  ;;  %p1023_p8 = scmp.ge.s32.totalorder %s1445_s20, 1 }
  0x3c   : > { %s266_s1 = sshll.u32 %s257_s7, 4  ;;  %p274_p9 = scmp.lt.s32.totalorder %s1445_s20, 3  ;;  %s1617_s1 = int_to_ptr.vmem [resolvable:$true] %s266_s1 }
  0x3d   : > { %s1014_s29 = sshll.u32 %s1552_s5, 6  ;;  %s1045_s12 = sshll.u32 %s1441_s19, 10 }
  0x3e   : > { %p1620_p11 = pnand %p1023_p8, %p274_p9  ;;  %s1629_s13 = scalar_lea.hbm %s1981_s0, %s1045_s12 }
  0x3f   : > { %s210_s9 = scalar_lea.vmem [#allocation3], %s1014_s29  ;;  %s207_s10 = scalar_lea.sflag [#allocation4], %s1552_s5 }
  0x40   : > { %s2005_s23 = scalar_select %p1620_p11, 1, 0 }
  0x41   : > { %s220_s6 = sshll.u32 %s210_s9, 4  ;;  %s1267_s7 = scalar_lea.hbm %s1629_s13, 1024  ;;  %s1631_s6 = int_to_ptr.vmem [resolvable:$true] %s220_s6 }
  0x42   : > { %p1268_p12 = scmp.ne.s32.totalorder %s1629_s13, %s1267_s7  ;;  %s1272_s24 = scalar_lea.hbm %s1981_s0, 2048 }
  0x43   : > { %p1273_p10 = scmp.lt.u32.totalorder %s1629_s13, %s1981_s0  ;;  %p1274_p13 = scmp.lt.u32.totalorder %s1272_s24, %s1267_s7 }
  0x44   : > { %p1270_p4 = pnand %p1268_p12, %p1580_p2  ;;  %p1276_p3 = scmp.lt.u32.totalorder %s1267_s7, %s1629_s13 }
  0x45   : > { %p1275_p1 = por %p1274_p13, %p1273_p10 }
  0x46   : > { %p1271_p7 = pneg %p1270_p4 }
  0x47   : > { %p1277_p5 = por %p1276_p3, %p1275_p1 }
  0x49   : > { %p1278_p6 = pnand %p1277_p5, %p1271_p7 }
  0x4b   : > { %1281 = shalt.err (!%p1278_p6)
}
  0x4c   : > { %s1282_s29 = scalar_lea.vmem %s1631_s6, 1024  ;;  %s1450_s19 = smov [#allocation3]  }
  0x4d   : > { %p1283_p8 = scmp.ne.s32.totalorder %s1631_s6, %s1282_s29  ;;  %s1287_s11 = sshll.u32 %s1450_s19, 4  ;;  %s1288_s11 = int_to_ptr.vmem [resolvable:$false] %s1287_s11 }
  0x4e   : > { %s1289_s9 = scalar_lea.vmem %s1288_s11, 2048  ;;  %p1290_p4 = scmp.lt.s32.totalorder %s1631_s6, %s1288_s11 }
  0x4f   : > { %p1285_p9 = pnand %p1283_p8, %p1580_p2  ;;  %p1291_p11 = scmp.lt.s32.totalorder %s1289_s9, %s1282_s29 }
  0x51   : > { %p1286_p12 = pneg %p1285_p9  ;;  %p1292_p10 = por %p1291_p11, %p1290_p4 }
  0x53   : > { %p1293_p13 = pnand %p1292_p10, %p1286_p12 }
  0x55   : > { %1296 = shalt.err (!%p1293_p13)
}
  0x56   : > { %s1451_s7 = smov 64   ;;  %s1452_s24 = smov 4  }
  0x57   : > { %1127 = dma.hbm_to_vmem [thread:$0]  (!%p1558_p0), %s1629_s13, 1024, %s1631_s6, %s207_s10, %s1451_s7, %s1451_s7, %s1452_s24  }
  0x58   : > { %s1297_s12 = scalar_lea.hbm %s1612_s26, 2048  ;;  %s1302_s19 = scalar_lea.hbm %s1983_s2, 4096 }
  0x59   : > { %p1298_p7 = scmp.ne.s32.totalorder %s1612_s26, %s1297_s12  ;;  %p1303_p3 = scmp.lt.u32.totalorder %s1612_s26, %s1983_s2 }
  0x5a   : > { %p1304_p5 = scmp.lt.u32.totalorder %s1302_s19, %s1297_s12  ;;  %p1306_p8 = scmp.lt.u32.totalorder %s1297_s12, %s1612_s26 }
  0x5b   : > { %p1300_p11 = pnand %p1298_p7, %p1580_p2 }
  0x5c   : > { %p1305_p6 = por %p1304_p5, %p1303_p3 }
  0x5d   : > { %p1301_p1 = pneg %p1300_p11 }
  0x5e   : > { %p1307_p9 = por %p1306_p8, %p1305_p6 }
  0x60   : > { %p1308_p12 = pnand %p1307_p9, %p1301_p1 }
  0x62   : > { %1311 = shalt.err (!%p1308_p12)
}
  0x63   : > { %s1312_s5 = scalar_lea.vmem %s1617_s1, 2048  ;;  %s1453_s13 = smov [#allocation8]  }
  0x64   : > { %p1313_p4 = scmp.ne.s32.totalorder %s1617_s1, %s1312_s5  ;;  %s1317_s6 = sshll.u32 %s1453_s13, 4  ;;  %s1318_s6 = int_to_ptr.vmem [resolvable:$false] %s1317_s6 }
  0x65   : > { %s1319_s10 = scalar_lea.vmem %s1318_s6, 4096  ;;  %p1320_p7 = scmp.lt.s32.totalorder %s1617_s1, %s1318_s6 }
  0x66   : > { %p1315_p10 = pnand %p1313_p4, %p1580_p2  ;;  %p1321_p11 = scmp.lt.s32.totalorder %s1319_s10, %s1312_s5 }
  0x68   : > { %p1316_p13 = pneg %p1315_p10  ;;  %p1322_p3 = por %p1321_p11, %p1320_p7 }
  0x6a   : > { %p1323_p5 = pnand %p1322_p3, %p1316_p13 }
  0x6c   : > { %1326 = shalt.err (!%p1323_p5)
}
  0x6d   : > { %s2006_s7 = smov 8   ;;  %s2007_s24 = smov 128  }
  0x6e   : > { %1133 = dma.hbm_to_vmem [thread:$0]  (!%p1558_p0), %s1612_s26, 2048, %s1617_s1, %s1574_s22, %s2007_s24, %s2007_s24, %s2006_s7  }
  0x6f   : > { %p2008_p2 = scmp.ne.s32.totalorder %s2005_s23, 0 }
  0x70   : > { %s1685_s25 = sand.u32 (!%p2008_p2), 1, %s1429_s16   ;;  %p2009_p1 = scmp.ne.s32.totalorder (!%p2008_p2), %s1997_s27, 0 }
  0x71   : > { %278 = sbr.rel (%p2008_p2) target bundleno = 575 (0x23f), region = 32  ;;  %s1024_s12 = sshll.u32 (!%p2008_p2), %s1685_s25, 6 }
  0x72   : > { %s281_s14 = scalar_lea.sflag (!%p2008_p2), [#allocation4], %s1685_s25  ;;  %s1689_s29 = scalar_lea.vmem (!%p2008_p2), [#allocation3], %s1024_s12 }
  0x78   : > { %1408 = dma.done.wait (%p2009_p1), %s281_s14, 1024  }
  0x79   : > { %1410 = vsyncadd (%p2009_p1), %s281_s14, 4294966272  ;;  %s289_s1 = sand.u32 1, %s1514_s21   ;;  %s1697_s23 = sshll.u32 %s1685_s25, 7 }
  0x7a   : > { %s290_s8 = scalar_lea.sflag [#allocation7], %s289_s1  ;;  %s1700_s22 = scalar_lea.vmem [#allocation6], %s1697_s23 }
  0x7b   : > { %1412 = dma.done.wait (%p2009_p1), %s290_s8, 4096  }
  0x7c   : > { %1414 = vsyncadd (%p2009_p1), %s290_s8, 4294963200  ;;  %v400_v0 = vld [vmem:[%s1700_s22] sm:$0xff]  ;;  %v401_v1 = vld [vmem:[%s1700_s22 + $0x8] sm:$0xff]  ;;  %s1751_s21 = scalar_lea.vmem [#allocation9], %s1697_s23  ;;  %s1048_s27 = sshll.u32 %s1437_s18, 11 }
  0x7d   : > { %v402_v2 = vld [vmem:[%s1700_s22 + $0x10] sm:$0xff]  ;;  %v416_v3 = vpack.c.bf16 %v401_v1, %v400_v0  ;;  %v403_v4 = vld [vmem:[%s1700_s22 + $0x18] sm:$0xff]  ;;  %v404_v6 = vld [vmem:[%s1700_s22 + $0x20] sm:$0xff]  ;;  %s817_s26 = sshll.u32 %s1751_s21, 4  ;;  %s1836_s9 = scalar_lea.hbm %s1984_s3, %s1048_s27  ;;  %s1838_s26 = int_to_ptr.vmem [resolvable:$true] %s817_s26 }
  0x7e   : > { %v417_v5 = vpack.c.bf16 %v403_v4, %v402_v2  ;;  %v405_v7 = vld [vmem:[%s1700_s22 + $0x28] sm:$0xff]  ;;  %v406_v8 = vld [vmem:[%s1700_s22 + $0x30] sm:$0xff]  ;;  %v407_v10 = vld [vmem:[%s1700_s22 + $0x38] sm:$0xff]  ;;  %s797_s5 = scalar_lea.sflag [#allocation5], %s1685_s25  ;;  %s1327_s13 = scalar_lea.vmem %s1838_s26, 2048 }
  0x7f   : > { %1066 = vmatprep.subr.bf16.mxu0 %v416_v3  ;;  %1098 = vmatprep.subr.bf16.mxu1 %v416_v3  ;;  %v418_v9 = vpack.c.bf16 %v405_v7, %v404_v6  ;;  %v1197_v11 = vld [vmem:[%s1689_s29] sm:$0xff]   ;;  %v419_v13 = vpack.c.bf16 %v407_v10, %v406_v8  ;;  %v409_v15 = vld [vmem:[%s1700_s22 + $0x48] sm:$0xff]  ;;  %v410_v17 = vld [vmem:[%s1700_s22 + $0x50] sm:$0xff]  ;;  %p1328_p0 = scmp.ne.s32.totalorder %s1838_s26, %s1327_s13  ;;  %p2010_p6 = scmp.ne.s32.totalorder %s1998_s28, 0 }
  0x80   : > { %1067 = vmatpush3.bf16.msra.mxu0 %v416_v3  ;;  %1106 = vmatpush3.bf16.msra.mxu1 %v416_v3  ;;  %v1198_v12 = vld [vmem:[%s1689_s29 + $0x20] sm:$0xff]   ;;  %v411_v18 = vld [vmem:[%s1700_s22 + $0x58] sm:$0xff]  ;;  %v413_v21 = vld [vmem:[%s1700_s22 + $0x68] sm:$0xff]  ;;  %s1454_s6 = smov [#allocation9]  }
  0x81   : > { %1068 = vmatprep.subr.bf16.mxu0 %v417_v5  ;;  %1099 = vmatprep.subr.bf16.mxu1 %v417_v5  ;;  %v408_v14 = vld [vmem:[%s1700_s22 + $0x40] sm:$0xff]  ;;  %v421_v19 = vpack.c.bf16 %v411_v18, %v410_v17  ;;  %v414_v23 = vld [vmem:[%s1700_s22 + $0x70] sm:$0xff]  ;;  %v415_v24 = vld [vmem:[%s1700_s22 + $0x78] sm:$0xff]  ;;  %p1329_p8 = pnand %p1328_p0, %p2010_p6  ;;  %s1331_s10 = sshll.u32 %s1454_s6, 4  ;;  %s1332_s10 = int_to_ptr.vmem [resolvable:$false] %s1331_s10 }
  0x82   : > { %1082 = vmatprep.mubr.bf16.mxu0 %v1197_v11  ;;  %1090 = vmatprep.mubr.bf16.mxu1 %v1198_v12  ;;  %v420_v16 = vpack.c.bf16 %v409_v15, %v408_v14  ;;  %v412_v20 = vld [vmem:[%s1700_s22 + $0x60] sm:$0xff]  ;;  %v423_v25 = vpack.c.bf16 %v415_v24, %v414_v23  ;;  %v1199_v26 = vld [vmem:[%s1689_s29 + $0x8] sm:$0xff]   ;;  %v1201_v28 = vld [vmem:[%s1689_s29 + $0x10] sm:$0xff]   ;;  %s1333_s7 = scalar_lea.vmem %s1332_s10, 4096  ;;  %p1334_p12 = scmp.lt.s32.totalorder %s1838_s26, %s1332_s10 }
  0x83   : > { %v422_v22 = vpack.c.bf16 %v413_v21, %v412_v20  ;;  %v1200_v27 = vld [vmem:[%s1689_s29 + $0x28] sm:$0xff]   ;;  %v1203_v29 = vld [vmem:[%s1689_s29 + $0x30] sm:$0xff]   ;;  %v1202_v30 = vld [vmem:[%s1689_s29 + $0x18] sm:$0xff]   ;;  %p1330_p9 = pneg %p1329_p8  ;;  %p1335_p4 = scmp.lt.s32.totalorder %s1333_s7, %s1327_s13 }
  0x84   : > { %1069 = vmatpush3.bf16.msra.mxu0 %v417_v5  ;;  %1107 = vmatpush3.bf16.msra.mxu1 %v417_v5  ;;  %v1204_v31 = vld [vmem:[%s1689_s29 + $0x38] sm:$0xff]  }
  0x85   : > { %1070 = vmatprep.subr.bf16.mxu0 %v418_v9  ;;  %1100 = vmatprep.subr.bf16.mxu1 %v418_v9  ;;  %p1336_p10 = por %p1335_p4, %p1334_p12 }
  0x87   : > { %p1337_p13 = pnand %p1336_p10, %p1330_p9 }
  0x88   : > { %1071 = vmatpush3.bf16.msra.mxu0 %v418_v9  ;;  %1108 = vmatpush3.bf16.msra.mxu1 %v418_v9 }
  0x89   : > { %1072 = vmatprep.subr.bf16.mxu0 %v419_v13  ;;  %1101 = vmatprep.subr.bf16.mxu1 %v419_v13 }
  0x8c   : > { %1073 = vmatpush3.bf16.msra.mxu0 %v419_v13  ;;  %1109 = vmatpush3.bf16.msra.mxu1 %v419_v13 }
  0x8d   : > { %1074 = vmatprep.subr.bf16.mxu0 %v420_v16  ;;  %1102 = vmatprep.subr.bf16.mxu1 %v420_v16 }
  0x90   : > { %1075 = vmatpush3.bf16.msra.mxu0 %v420_v16  ;;  %1110 = vmatpush3.bf16.msra.mxu1 %v420_v16 }
  0x91   : > { %1076 = vmatprep.subr.bf16.mxu0 %v421_v19  ;;  %1103 = vmatprep.subr.bf16.mxu1 %v421_v19 }
  0x94   : > { %1077 = vmatpush3.bf16.msra.mxu0 %v421_v19  ;;  %1111 = vmatpush3.bf16.msra.mxu1 %v421_v19 }
  0x95   : > { %1078 = vmatprep.subr.bf16.mxu0 %v422_v22  ;;  %1104 = vmatprep.subr.bf16.mxu1 %v422_v22 }
  0x98   : > { %1079 = vmatpush3.bf16.msra.mxu0 %v422_v22  ;;  %1112 = vmatpush3.bf16.msra.mxu1 %v422_v22 }
  0x99   : > { %1080 = vmatprep.subr.bf16.mxu0 %v423_v25  ;;  %1105 = vmatprep.subr.bf16.mxu1 %v423_v25 }
  0x9c   : > { %1081 = vmatpush3.bf16.msra.mxu0 %v423_v25  ;;  %1113 = vmatpush3.bf16.msra.mxu1 %v423_v25 }
  0x9f   : > { %1083 = vmatmul.mubr.bf16.vlgmr.msra.gmra.mrb[0].mxu0 %v1199_v26  ;;  %1091 = vmatmul.mubr.bf16.vlgmr.msra.gmra.mrb[0].mxu1 %v1200_v27 }
  0xa0   : > { %1086 = vmatprep.mubr.bf16.mxu0 %v1201_v28  ;;  %1094 = vmatprep.mubr.bf16.mxu1 %v1203_v29 }
  0xa7   : > { %1087 = vmatmul.mubr.bf16.gmra.mrb[4].mxu0 %v1202_v30  ;;  %1095 = vmatmul.mubr.bf16.gmra.mrb[4].mxu1 %v1204_v31 }
 0x172   : > { %v1730_v32 = vpop.f32.mrb[0].mxu0  ;;  %v1732_v33 = vpop.f32.mrb[0].mxu1 }
 0x173   : > { %v702_v34 = vmul.f32 0.5, %v1730_v32  ;;  %v710_v35 = vmul.f32 0.5, %v1732_v33  ;;  %v1736_v36 = vpop.f32.mrb[1].mxu0  ;;  %v1738_v37 = vpop.f32.mrb[1].mxu1  ;;  %v630_v38 = vmul.f32 %v1732_v33, %v1732_v33  ;;  %v622_v39 = vmul.f32 %v1730_v32, %v1730_v32 }
 0x174   : > { %v700_v40 = vmul.f32 0.5, %v1736_v36  ;;  %v708_v41 = vmul.f32 0.5, %v1738_v37  ;;  %v1746_v42 = vpop.f32.mrb[2].mxu0  ;;  %v1748_v43 = vpop.f32.mrb[2].mxu1  ;;  %v620_v50 = vmul.f32 %v1736_v36, %v1736_v36  ;;  %v628_v54 = vmul.f32 %v1738_v37, %v1738_v37 }
 0x175   : > { %718 = vst [vmem:[%s1751_s21 + $0x10] sm:$0xff] %v702_v34  ;;  %726 = vst [vmem:[%s1751_s21 + $0x50] sm:$0xff] %v710_v35  ;;  %v703_v44 = vmul.f32 0.5, %v1746_v42  ;;  %v711_v45 = vmul.f32 0.5, %v1748_v43  ;;  %656 = vadd.xlane.f32.xlu0 %v630_v38  ;;  %v1757_v46 = vpop.f32.mrb[3].mxu1  ;;  %640 = vadd.xlane.f32.xlu1 %v622_v39  ;;  %v1759_v47 = vpop.f32.mrb[3].mxu0  ;;  %v623_v51 = vmul.f32 %v1746_v42, %v1746_v42 }
 0x176   : > { %716 = vst [vmem:[%s1751_s21] sm:$0xff] %v700_v40  ;;  %724 = vst [vmem:[%s1751_s21 + $0x40] sm:$0xff] %v708_v41  ;;  %v709_v48 = vmul.f32 0.5, %v1757_v46  ;;  %v701_v49 = vmul.f32 0.5, %v1759_v47  ;;  %v631_v55 = vmul.f32 %v1748_v43, %v1748_v43  ;;  %v629_v6 = vmul.f32 %v1757_v46, %v1757_v46 }
 0x177   : > { %719 = vst [vmem:[%s1751_s21 + $0x18] sm:$0xff] %v703_v44  ;;  %727 = vst [vmem:[%s1751_s21 + $0x58] sm:$0xff] %v711_v45  ;;  %v621_v7 = vmul.f32 %v1759_v47, %v1759_v47 }
 0x178   : > { %725 = vst [vmem:[%s1751_s21 + $0x48] sm:$0xff] %v709_v48  ;;  %717 = vst [vmem:[%s1751_s21 + $0x8] sm:$0xff] %v701_v49 }
 0x179   : > { %636 = vadd.xlane.f32.xlu0 %v620_v50  ;;  %642 = vadd.xlane.f32.xlu1 %v623_v51 }
 0x17a   : > { %v1773_v52 = vpop.f32.mrb[4].mxu0  ;;  %v1775_v53 = vpop.f32.mrb[4].mxu1 }
 0x17b   : > { %v706_v56 = vmul.f32 0.5, %v1773_v52  ;;  %v1782_v57 = vpop.f32.mrb[5].mxu0  ;;  %v714_v58 = vmul.f32 0.5, %v1775_v53  ;;  %v1785_v59 = vpop.f32.mrb[5].mxu1  ;;  %v626_v8 = vmul.f32 %v1773_v52, %v1773_v52  ;;  %v634_v14 = vmul.f32 %v1775_v53, %v1775_v53 }
 0x17c   : > { %v704_v60 = vmul.f32 0.5, %v1782_v57  ;;  %v1788_v61 = vpop.f32.mrb[6].mxu0  ;;  %v712_v62 = vmul.f32 0.5, %v1785_v59  ;;  %v1791_v63 = vpop.f32.mrb[6].mxu1  ;;  %v624_v10 = vmul.f32 %v1782_v57, %v1782_v57  ;;  %v632_v12 = vmul.f32 %v1785_v59, %v1785_v59 }
 0x17d   : > { %652 = vadd.xlane.f32.xlu0 %v628_v54  ;;  %658 = vadd.xlane.f32.xlu1 %v631_v55  ;;  %722 = vst [vmem:[%s1751_s21 + $0x30] sm:$0xff] %v706_v56  ;;  %v707_v0 = vmul.f32 0.5, %v1788_v61  ;;  %v1795_v1 = vpop.f32.mrb[7].mxu0  ;;  %730 = vst [vmem:[%s1751_s21 + $0x70] sm:$0xff] %v714_v58  ;;  %v715_v2 = vmul.f32 0.5, %v1791_v63  ;;  %v1799_v3 = vpop.f32.mrb[7].mxu1  ;;  %v627_v9 = vmul.f32 %v1788_v61, %v1788_v61 }
 0x17e   : > { %720 = vst [vmem:[%s1751_s21 + $0x20] sm:$0xff] %v704_v60  ;;  %v705_v4 = vmul.f32 0.5, %v1795_v1  ;;  %728 = vst [vmem:[%s1751_s21 + $0x60] sm:$0xff] %v712_v62  ;;  %v713_v5 = vmul.f32 0.5, %v1799_v3  ;;  %v625_v11 = vmul.f32 %v1795_v1, %v1795_v1  ;;  %v633_v13 = vmul.f32 %v1799_v3, %v1799_v3 }
 0x17f   : > { %723 = vst [vmem:[%s1751_s21 + $0x38] sm:$0xff] %v707_v0  ;;  %731 = vst [vmem:[%s1751_s21 + $0x78] sm:$0xff] %v715_v2  ;;  %v635_v15 = vmul.f32 %v1791_v63, %v1791_v63 }
 0x180   : > { %721 = vst [vmem:[%s1751_s21 + $0x28] sm:$0xff] %v705_v4  ;;  %729 = vst [vmem:[%s1751_s21 + $0x68] sm:$0xff] %v713_v5 }
 0x181   : > { %654 = vadd.xlane.f32.xlu1 %v629_v6  ;;  %638 = vadd.xlane.f32.xlu0 %v621_v7 }
 0x185   : > { %648 = vadd.xlane.f32.xlu0 %v626_v8  ;;  %650 = vadd.xlane.f32.xlu1 %v627_v9 }
 0x189   : > { %644 = vadd.xlane.f32.xlu0 %v624_v10  ;;  %646 = vadd.xlane.f32.xlu1 %v625_v11 }
 0x18d   : > { %660 = vadd.xlane.f32.xlu0 %v632_v12  ;;  %662 = vadd.xlane.f32.xlu1 %v633_v13 }
 0x191   : > { %664 = vadd.xlane.f32.xlu0 %v634_v14  ;;  %666 = vadd.xlane.f32.xlu1 %v635_v15 }
 0x192   : > { %1340 = shalt.err (!%p1337_p13)
}
 0x193   : > { %s1341_s24 = scalar_lea.hbm %s1836_s9, 2048  ;;  %s1345_s29 = scalar_lea.hbm %s1984_s3, 4096 }
 0x194   : > { %p1342_p7 = scmp.ne.s32.totalorder %s1836_s9, %s1341_s24  ;;  %p1346_p5 = scmp.lt.u32.totalorder %s1836_s9, %s1984_s3 }
 0x195   : > { %p1347_p2 = scmp.lt.u32.totalorder %s1345_s29, %s1341_s24  ;;  %p1349_p0 = scmp.lt.u32.totalorder %s1341_s24, %s1836_s9 }
 0x196   : > { %p1343_p11 = pnand %p1342_p7, %p2010_p6 }
 0x197   : > { %p1348_p1 = por %p1347_p2, %p1346_p5 }
 0x198   : > { %p1344_p3 = pneg %p1343_p11 }
 0x199   : > { %p1350_p8 = por %p1349_p0, %p1348_p1 }
 0x19b   : > { %p1351_p9 = pnand %p1350_p8, %p1344_p3 }
 0x19d   : > { %1354 = shalt.err (!%p1351_p9)
}
 0x19e   : > { %s1455_s22 = smov 128   ;;  %s1456_s21 = smov 8  }
 0x19f   : > { %1120 = dma.vmem_to_hbm [thread:$0]  (%p2010_p6), %s1838_s26, 2048, %s1836_s9, %s797_s5, %s1455_s22, %s1455_s22, %s1456_s21  }
 0x1a0   : > { %s1868_s26 = scalar_lea.vmem [#allocation8], %s1697_s23  ;;  %s1876_s19 = scalar_lea.vmem [#allocation10], %s1697_s23 }
 0x1a1   : > { %v742_v31 = vld [vmem:[%s1868_s26 + $0x50] sm:$0xff]  ;;  %v732_v51 = vld [vmem:[%s1868_s26] sm:$0xff]  ;;  %v743_v9 = vld [vmem:[%s1868_s26 + $0x58] sm:$0xff]  ;;  %s835_s23 = sshll.u32 %s1876_s19, 4  ;;  %s1925_s5 = scalar_lea.hbm %s1985_s4, %s1048_s27  ;;  %s1927_s23 = int_to_ptr.vmem [resolvable:$true] %s835_s23 }
 0x1a2   : > { %v734_v40 = vld [vmem:[%s1868_s26 + $0x10] sm:$0xff]  ;;  %v740_v5 = vld [vmem:[%s1868_s26 + $0x40] sm:$0xff]  ;;  %v741_v15 = vld [vmem:[%s1868_s26 + $0x48] sm:$0xff]  ;;  %s802_s13 = scalar_lea.sflag [#allocation11], %s1685_s25  ;;  %s1355_s6 = scalar_lea.vmem %s1927_s23, 2048 }
 0x1a3   : > { %p1356_p12 = scmp.ne.s32.totalorder %s1927_s23, %s1355_s6  ;;  %s1457_s10 = smov [#allocation10]  }
 0x1a4   : > { %s1359_s18 = sshll.u32 %s1457_s10, 4  ;;  %s1360_s18 = int_to_ptr.vmem [resolvable:$false] %s1359_s18 }
 0x1a5   : > { %p1357_p4 = pnand %p1356_p12, %p2010_p6  ;;  %s1361_s7 = scalar_lea.vmem %s1360_s18, 4096 }
 0x1a6   : > { %p1362_p13 = scmp.lt.s32.totalorder %s1927_s23, %s1360_s18  ;;  %p1363_p7 = scmp.lt.s32.totalorder %s1361_s7, %s1355_s6 }
 0x1a7   : > { %p1358_p10 = pneg %p1357_p4 }
 0x1a8   : > { %p1364_p11 = por %p1363_p7, %p1362_p13 }
 0x1aa   : > { %p1365_p3 = pnand %p1364_p11, %p1358_p10 }
 0x202   : > { %v657_v16 = vpop.xlane.xlu0 %656  ;;  %v641_v17 = vpop.xlane.xlu1 %640 }
 0x203   : > { %v678_v18 = vmax.f32 %v657_v16, 1e-24  ;;  %v670_v19 = vmax.f32 %v641_v17, 1e-24 }
 0x205   : > { %1205 = vrsqrt.f32 %v678_v18 }
 0x206   : > { %1207 = vrsqrt.f32 %v670_v19  ;;  %v637_v20 = vpop.xlane.xlu0 %636  ;;  %v643_v21 = vpop.xlane.xlu1 %642  ;;  %v733_v19 = vld [vmem:[%s1868_s26 + $0x8] sm:$0xff] }
 0x207   : > { %v668_v22 = vmax.f32 %v637_v20, 1e-24  ;;  %v671_v23 = vmax.f32 %v643_v21, 1e-24 }
 0x209   : > { %1209 = vrsqrt.f32 %v668_v22 }
 0x20a   : > { %1211 = vrsqrt.f32 %v671_v23  ;;  %v653_v24 = vpop.xlane.xlu0 %652  ;;  %v659_v25 = vpop.xlane.xlu1 %658 }
 0x20b   : > { %v676_v26 = vmax.f32 %v653_v24, 1e-24  ;;  %v679_v27 = vmax.f32 %v659_v25, 1e-24  ;;  %v738_v25 = vld [vmem:[%s1868_s26 + $0x30] sm:$0xff] }
 0x20d   : > { %1213 = vrsqrt.f32 %v676_v26 }
 0x20e   : > { %1215 = vrsqrt.f32 %v679_v27  ;;  %v655_v28 = vpop.xlane.xlu1 %654  ;;  %v639_v29 = vpop.xlane.xlu0 %638 }
 0x20f   : > { %v1206_v30 = vpop.eup %1205  ;;  %v677_v34 = vmax.f32 %v655_v28, 1e-24  ;;  %v669_v35 = vmax.f32 %v639_v29, 1e-24  ;;  %v739_v29 = vld [vmem:[%s1868_s26 + $0x38] sm:$0xff] }
 0x210   : > { %v1208_v38 = vpop.eup %1207  ;;  %v758_v39 = vmul.f32 %v1206_v30, %v1732_v33  ;;  %v735_v33 = vld [vmem:[%s1868_s26 + $0x18] sm:$0xff] }
 0x211   : > { %v750_v41 = vmul.f32 %v1208_v38, %v1730_v32  ;;  %1217 = vrsqrt.f32 %v677_v34 }
 0x212   : > { %v774_v44 = vadd.f32 %v758_v39, %v742_v31  ;;  %1219 = vrsqrt.f32 %v669_v35  ;;  %v649_v45 = vpop.xlane.xlu0 %648  ;;  %v651_v48 = vpop.xlane.xlu1 %650  ;;  %v736_v35 = vld [vmem:[%s1868_s26 + $0x20] sm:$0xff] }
 0x213   : > { %v1210_v49 = vpop.eup %1209  ;;  %v766_v50 = vadd.f32 %v750_v41, %v734_v40  ;;  %v674_v54 = vmax.f32 %v649_v45, 1e-24  ;;  %v675_v55 = vmax.f32 %v651_v48, 1e-24  ;;  %v737_v40 = vld [vmem:[%s1868_s26 + $0x28] sm:$0xff]  ;;  %v744_v45 = vld [vmem:[%s1868_s26 + $0x60] sm:$0xff] }
 0x214   : > { %v1212_v56 = vpop.eup %1211  ;;  %790 = vst [vmem:[%s1876_s19 + $0x50] sm:$0xff] %v774_v44  ;;  %v748_v32 = vmul.f32 %v1210_v49, %v1736_v36 }
 0x215   : > { %782 = vst [vmem:[%s1876_s19 + $0x10] sm:$0xff] %v766_v50  ;;  %v751_v58 = vmul.f32 %v1212_v56, %v1746_v42  ;;  %1221 = vrsqrt.f32 %v674_v54  ;;  %v745_v50 = vld [vmem:[%s1868_s26 + $0x68] sm:$0xff] }
 0x216   : > { %v764_v60 = vadd.f32 %v748_v32, %v732_v51  ;;  %1223 = vrsqrt.f32 %v675_v55  ;;  %v645_v62 = vpop.xlane.xlu0 %644  ;;  %v647_v0 = vpop.xlane.xlu1 %646  ;;  %v746_v55 = vld [vmem:[%s1868_s26 + $0x70] sm:$0xff] }
 0x217   : > { %v1214_v2 = vpop.eup %1213  ;;  %v767_v4 = vadd.f32 %v751_v58, %v735_v33  ;;  %v672_v6 = vmax.f32 %v645_v62, 1e-24  ;;  %v673_v7 = vmax.f32 %v647_v0, 1e-24  ;;  %v747_v33 = vld [vmem:[%s1868_s26 + $0x78] sm:$0xff] }
 0x218   : > { %v1216_v8 = vpop.eup %1215  ;;  %780 = vst [vmem:[%s1876_s19] sm:$0xff] %v764_v60  ;;  %v756_v36 = vmul.f32 %v1214_v2, %v1738_v37 }
 0x219   : > { %783 = vst [vmem:[%s1876_s19 + $0x18] sm:$0xff] %v767_v4  ;;  %v759_v42 = vmul.f32 %v1216_v8, %v1748_v43  ;;  %1225 = vrsqrt.f32 %v672_v6 }
 0x21a   : > { %v772_v10 = vadd.f32 %v756_v36, %v740_v5  ;;  %1227 = vrsqrt.f32 %v673_v7  ;;  %v661_v11 = vpop.xlane.xlu0 %660  ;;  %v663_v12 = vpop.xlane.xlu1 %662 }
 0x21b   : > { %v1218_v13 = vpop.eup %1217  ;;  %v775_v14 = vadd.f32 %v759_v42, %v743_v9  ;;  %v680_v16 = vmax.f32 %v661_v11, 1e-24  ;;  %v681_v17 = vmax.f32 %v663_v12, 1e-24 }
 0x21c   : > { %v1220_v18 = vpop.eup %1219  ;;  %788 = vst [vmem:[%s1876_s19 + $0x40] sm:$0xff] %v772_v10  ;;  %v757_v37 = vmul.f32 %v1218_v13, %v1757_v46 }
 0x21d   : > { %791 = vst [vmem:[%s1876_s19 + $0x58] sm:$0xff] %v775_v14  ;;  %v749_v43 = vmul.f32 %v1220_v18, %v1759_v47  ;;  %1229 = vrsqrt.f32 %v680_v16 }
 0x21e   : > { %v773_v20 = vadd.f32 %v757_v37, %v741_v15  ;;  %1231 = vrsqrt.f32 %v681_v17  ;;  %v665_v21 = vpop.xlane.xlu0 %664  ;;  %v667_v22 = vpop.xlane.xlu1 %666 }
 0x21f   : > { %v1222_v23 = vpop.eup %1221  ;;  %v765_v24 = vadd.f32 %v749_v43, %v733_v19  ;;  %v682_v26 = vmax.f32 %v665_v21, 1e-24  ;;  %v683_v27 = vmax.f32 %v667_v22, 1e-24 }
 0x220   : > { %v1224_v46 = vpop.eup %1223  ;;  %789 = vst [vmem:[%s1876_s19 + $0x48] sm:$0xff] %v773_v20  ;;  %v754_v28 = vmul.f32 %v1222_v23, %v1773_v52 }
 0x221   : > { %781 = vst [vmem:[%s1876_s19 + $0x8] sm:$0xff] %v765_v24  ;;  %v755_v47 = vmul.f32 %v1224_v46, %v1788_v61  ;;  %1233 = vrsqrt.f32 %v682_v26 }
 0x222   : > { %v770_v30 = vadd.f32 %v754_v28, %v738_v25  ;;  %1235 = vrsqrt.f32 %v683_v27 }
 0x223   : > { %v1226_v31 = vpop.eup %1225  ;;  %v771_v34 = vadd.f32 %v755_v47, %v739_v29 }
 0x224   : > { %v1228_v38 = vpop.eup %1227  ;;  %786 = vst [vmem:[%s1876_s19 + $0x30] sm:$0xff] %v770_v30  ;;  %v752_v39 = vmul.f32 %v1226_v31, %v1782_v57 }
 0x225   : > { %787 = vst [vmem:[%s1876_s19 + $0x38] sm:$0xff] %v771_v34  ;;  %v753_v52 = vmul.f32 %v1228_v38, %v1795_v1 }
 0x226   : > { %v768_v61 = vadd.f32 %v752_v39, %v736_v35 }
 0x227   : > { %v1230_v41 = vpop.eup %1229  ;;  %v769_v44 = vadd.f32 %v753_v52, %v737_v40 }
 0x228   : > { %v1232_v48 = vpop.eup %1231  ;;  %784 = vst [vmem:[%s1876_s19 + $0x20] sm:$0xff] %v768_v61  ;;  %v760_v49 = vmul.f32 %v1230_v41, %v1785_v59 }
 0x229   : > { %785 = vst [vmem:[%s1876_s19 + $0x28] sm:$0xff] %v769_v44  ;;  %v761_v57 = vmul.f32 %v1232_v48, %v1799_v3 }
 0x22a   : > { %v776_v51 = vadd.f32 %v760_v49, %v744_v45 }
 0x22b   : > { %v1234_v1 = vpop.eup %1233  ;;  %v777_v54 = vadd.f32 %v761_v57, %v745_v50 }
 0x22c   : > { %v1236_v56 = vpop.eup %1235  ;;  %792 = vst [vmem:[%s1876_s19 + $0x60] sm:$0xff] %v776_v51  ;;  %v762_v32 = vmul.f32 %v1234_v1, %v1775_v53 }
 0x22d   : > { %793 = vst [vmem:[%s1876_s19 + $0x68] sm:$0xff] %v777_v54  ;;  %v763_v59 = vmul.f32 %v1236_v56, %v1791_v63 }
 0x22e   : > { %v778_v58 = vadd.f32 %v762_v32, %v746_v55 }
 0x22f   : > { %v779_v60 = vadd.f32 %v763_v59, %v747_v33 }
 0x230   : > { %794 = vst [vmem:[%s1876_s19 + $0x70] sm:$0xff] %v778_v58 }
 0x231   : > { %795 = vst [vmem:[%s1876_s19 + $0x78] sm:$0xff] %v779_v60 }
 0x232   : > { %1368 = shalt.err (!%p1365_p3)
}
 0x233   : > { %s1369_s27 = scalar_lea.hbm %s1925_s5, 2048  ;;  %s1373_s14 = scalar_lea.hbm %s1985_s4, 4096 }
 0x234   : > { %p1370_p5 = scmp.ne.s32.totalorder %s1925_s5, %s1369_s27  ;;  %p1374_p0 = scmp.lt.u32.totalorder %s1925_s5, %s1985_s4 }
 0x235   : > { %p1375_p8 = scmp.lt.u32.totalorder %s1373_s14, %s1369_s27  ;;  %p1377_p12 = scmp.lt.u32.totalorder %s1369_s27, %s1925_s5 }
 0x236   : > { %p1371_p2 = pnand %p1370_p5, %p2010_p6 }
 0x237   : > { %p1376_p9 = por %p1375_p8, %p1374_p0 }
 0x238   : > { %p1372_p1 = pneg %p1371_p2 }
 0x239   : > { %p1378_p4 = por %p1377_p12, %p1376_p9 }
 0x23b   : > { %p1379_p10 = pnand %p1378_p4, %p1372_p1 }
 0x23d   : > { %1382 = shalt.err (!%p1379_p10)
}
 0x23e   : > { %1121 = dma.vmem_to_hbm [thread:$0]  (%p2010_p6), %s1927_s23, 2048, %s1925_s5, %s802_s13, %s1455_s22, %s1455_s22, %s1456_s21  }
 0x23f PF: > { %s850_s8 = sand.u32 1, %s1425_s15   ;;  %p2011_p13 = scmp.ne.s32.totalorder %s2000_s30, 0 }
 0x240   : > { %p2012_p7 = scmp.ge.s32.totalorder %s1445_s20, 2  ;;  %s851_s26 = scalar_lea.sflag [#allocation5], %s850_s8 }
 0x242   : > { %p1135_p11 = pnand %p2012_p7, %p2011_p13 }
 0x244   : > { %1416 = dma.done.wait (!%p1135_p11), %s851_s26, 2048  }
 0x245   : > { %1418 = vsyncadd (!%p1135_p11), %s851_s26, 4294965248  ;;  %s860_s28 = scalar_lea.sflag [#allocation11], %s850_s8 }
 0x246   : > { %1420 = dma.done.wait (!%p1135_p11), %s860_s28, 2048  }
 0x247   : > { %1422 = vsyncadd (!%p1135_p11), %s860_s28, 4294965248  ;;  %s27_s20 = sadd.s32 1, %s1445_s20   ;;  %s2013_s25 = sld [smem:[#allocation18_spill]] }
 0x248   : > { %p24_p3 = scmp.ge.s32.totalorder %s27_s20, 4   ;;  %s2014_s18 = sld [smem:[#allocation16_spill]] }
 0x249   : > { %s2015_s19 = sld [smem:[#allocation17_spill]]  ;;  %s2016_s15 = smov %s1429_s16 }
 0x24a   : > { %s2017_s16 = smov %s1433_s17  ;;  %26 = sbr.rel (!%p24_p3) target bundleno = 12 (0xc), region = 126 }
 0x24d   : > { %s2018_s17 = smov %s2013_s25 }
 0x251   :  { %865 = vsyncpa [#allocation4], 1 }
 0x252   :  { %867 = vsyncpa [#allocation4 + $0x1], 1 }
 0x253   :  { %868 = vsyncpa [#allocation7], 1 }
 0x254   :  { %870 = vsyncpa [#allocation7 + $0x1], 1 }
 0x255   :  { %871 = vsyncpa [#allocation5], 1 }
 0x256   :  { %873 = vsyncpa [#allocation5 + $0x1], 1 }
 0x257   :  { %874 = vsyncpa [#allocation11], 1 }
 0x258   :  { %876 = vsyncpa [#allocation11 + $0x1], 1 }

</bundles_post_ra>
